<compile_context>
chip_gen: v5e
topology: v5e:2x2
jax: 0.10.0
libtpu: 0.0.40
codegen_flags: <defaults>
</compile_context>

<pallas_src>
import functools

import jax
import jax.numpy as jnp
from jax.experimental import pallas as pl
from jax.experimental.pallas import tpu as pltpu

# Model hyper-parameters (the PyTorch module reads these as globals).
INPUT_SIZE = 256     # e.g. a 1x16x16 image flattened
HIDDEN_SIZE = 128
LATENT_SIZE = 32
MV_LANES = 128       # mean|logvar head zero-padded to a full 128-lane vreg
BATCH = 8            # small demo batch


def vae_kernel(x_ref, eps_ref,
               w1_ref, b1_ref,
               wmv_ref, bmv_ref,
               wd1_ref, bd1_ref,
               wd2_ref, bd2_ref,
               recon_ref, mv_ref):
    # encodinglayer1: Linear(input_size, hidden_size) + ReLU
    # (bf16 MXU operands, f32 accumulation)
    h = jnp.dot(x_ref[...], w1_ref[...],
                preferred_element_type=jnp.float32) + b1_ref[...]
    h = jnp.maximum(h, 0.0)

    # Fused + lane-padded mean|logvar head: cols [0,L)=mean, [L,2L)=logvar,
    # [2L,128)=zeros.  Single lane-dense dot and store instead of two 32-wide ones.
    mv = jnp.dot(h.astype(wmv_ref.dtype), wmv_ref[...],
                 preferred_element_type=jnp.float32) + bmv_ref[...]
    mean = mv[:, :LATENT_SIZE]
    log_var = mv[:, LATENT_SIZE:2 * LATENT_SIZE]

    # sample: z = eps * exp(0.5 * log_var) + mean   (f32 elementwise tail)
    std = jnp.exp(0.5 * log_var)
    z = eps_ref[...].astype(jnp.float32) * std + mean

    # decodinglayer: Linear(latent, hidden) + ReLU + Linear(hidden, input) + Sigmoid
    d = jnp.dot(z.astype(wd1_ref.dtype), wd1_ref[...],
                preferred_element_type=jnp.float32) + bd1_ref[...]
    d = jnp.maximum(d, 0.0)
    logits = jnp.dot(d.astype(wd2_ref.dtype), wd2_ref[...],
                     preferred_element_type=jnp.float32) + bd2_ref[...]

    # bf16 store halves the dominant HBM write stream (kernel is mem-bound).
    recon_ref[...] = jax.nn.sigmoid(logits).astype(recon_ref.dtype)
    # Packed lane-dense [tb, 128] f32 slab (mean|logvar|zero-pad); split outside.
    mv_ref[...] = mv


def _choose_tb(b):
    """Pick the batch tile.

    - b < 32: one full block (latency-bound, a single grid step is best).
    - b >= 32: at least 2 grid steps so both v7x TensorCores get work via
      dimension_semantics=("parallel",); the tile is a multiple of 16 (bf16
      sublane packing) and capped at 512 rows -- mem-bound tiled kernels hit
      85%+ of HBM roofline around 512-1024-row tiles while the ~0.35us
      per-step overhead stays amortized.  VMEM stays in the single-digit-MiB
      range even at the cap, so no per-generation fit issues.
    """
    if b < 32:
        return b                        # block dim == array dim
    half = b // 2
    return max(16, min(512, (half // 16) * 16))


def prepare_params(params):
    """One-time weight preparation, hoisted off the per-call hot path.

    Casts matmul operands to bf16 and builds the fused, 128-lane zero-padded
    mean|logvar head.  Call once; pass the result to vae_forward.
    """
    (w1, b1, wm, bm, wv, bv, wd1, bd1, wd2, bd2) = params
    bf16 = jnp.bfloat16
    pad = MV_LANES - 2 * LATENT_SIZE
    wmv = jnp.concatenate(
        [wm, wv, jnp.zeros((HIDDEN_SIZE, pad), jnp.float32)], axis=1)  # [H, 128]
    bmv = jnp.concatenate(
        [bm, bv, jnp.zeros((1, pad), jnp.float32)], axis=1)            # [1, 128]
    return (w1.astype(bf16), b1.astype(jnp.float32),
            wmv.astype(bf16), bmv.astype(jnp.float32),
            wd1.astype(bf16), bd1.astype(jnp.float32),
            wd2.astype(bf16), bd2.astype(jnp.float32))


@functools.partial(jax.jit, static_argnames=("tb",))
def vae_forward(x, eps, prepared_params, tb=None):
    """x: any shape whose trailing dims flatten to INPUT_SIZE (NCHW ok).

    prepared_params: output of prepare_params().
    Note: when tb does not divide the batch, the padded edge rows of the last
    grid step run exp/sigmoid on undefined data; the masked output write
    discards them, so this is intentional and harmless.
    """
    bf16 = jnp.bfloat16
    x_bf = x.reshape(-1, INPUT_SIZE).astype(bf16)   # direct bf16 cast, no f32 hop
    eps_bf = eps.astype(bf16)
    b = x_bf.shape[0]
    if tb is None:
        tb = _choose_tb(b)

    (w1, b1, wmv, bmv, wd1, bd1, wd2, bd2) = prepared_params

    def batch_spec(feat):
        return pl.BlockSpec((tb, feat), lambda i: (i, 0))

    def full_spec(shape):
        # Grid-invariant block: constant index_map, so the weight tile is only
        # DMA'd once and stays resident across grid steps.
        return pl.BlockSpec(shape, lambda i: (0, 0))

    out_shapes = (
        jax.ShapeDtypeStruct((b, INPUT_SIZE), bf16),        # reconstruction (bf16)
        jax.ShapeDtypeStruct((b, MV_LANES), jnp.float32),   # packed mean|logvar|pad
    )

    # Advisory cost estimate so XLA schedules/overlaps this small kernel well.
    matmul_macs = (INPUT_SIZE * HIDDEN_SIZE + HIDDEN_SIZE * MV_LANES
                   + LATENT_SIZE * HIDDEN_SIZE + HIDDEN_SIZE * INPUT_SIZE)
    weight_bytes = 2 * (w1.size + wmv.size + wd1.size + wd2.size) \
        + 4 * (b1.size + bmv.size + bd1.size + bd2.size)
    cost = pl.CostEstimate(
        flops=2 * b * matmul_macs,
        transcendentals=b * (LATENT_SIZE + INPUT_SIZE),
        bytes_accessed=(2 * x_bf.size + 2 * eps_bf.size + weight_bytes
                        + 2 * b * INPUT_SIZE + 4 * b * MV_LANES),
    )

    recon_bf, mv = pl.pallas_call(
        vae_kernel,
        out_shape=out_shapes,
        grid_spec=pltpu.PrefetchScalarGridSpec(
            num_scalar_prefetch=0,
            grid=(pl.cdiv(b, tb),),
            in_specs=[
                batch_spec(INPUT_SIZE),            # x (bf16)
                batch_spec(LATENT_SIZE),           # eps (bf16)
                full_spec(w1.shape), full_spec(b1.shape),
                full_spec(wmv.shape), full_spec(bmv.shape),
                full_spec(wd1.shape), full_spec(bd1.shape),
                full_spec(wd2.shape), full_spec(bd2.shape),
            ],
            out_specs=[
                batch_spec(INPUT_SIZE),
                batch_spec(MV_LANES),
            ],
        ),
        compiler_params=pltpu.CompilerParams(
            dimension_semantics=("parallel",)),
        cost_estimate=cost,
    )(x_bf, eps_bf, w1, b1, wmv, bmv, wd1, bd1, wd2, bd2)

    recon = recon_bf.astype(jnp.float32)
    mean = mv[:, :LATENT_SIZE]
    log_var = mv[:, LATENT_SIZE:2 * LATENT_SIZE]
    return recon, mean, log_var


def init_params(key):
    """Deterministic init mimicking PyTorch nn.Linear defaults (U(-1/sqrt(fan_in), +))."""
    def linear(k, fan_in, fan_out):
        kw, kb = jax.random.split(k)
        bound = 1.0 / jnp.sqrt(fan_in)
        w = jax.random.uniform(kw, (fan_in, fan_out), jnp.float32, -bound, bound)
        b = jax.random.uniform(kb, (1, fan_out), jnp.float32, -bound, bound)
        return w, b

    keys = jax.random.split(key, 5)
    w1, b1 = linear(keys[0], INPUT_SIZE, HIDDEN_SIZE)        # encodinglayer1
    wm, bm = linear(keys[1], HIDDEN_SIZE, LATENT_SIZE)       # encodinglayer2_mean
    wv, bv = linear(keys[2], HIDDEN_SIZE, LATENT_SIZE)       # encodinglayer2_logvar
    wd1, bd1 = linear(keys[3], LATENT_SIZE, HIDDEN_SIZE)     # decoder Linear 1
    wd2, bd2 = linear(keys[4], HIDDEN_SIZE, INPUT_SIZE)      # decoder Linear 2
    return (w1, b1, wm, bm, wv, bv, wd1, bd1, wd2, bd2)


def vae_reference(x, eps, params):
    """Pure-JAX reference mirroring the kernel's numerics (bf16 MXU operands and
    bf16 eps, f32 accumulation).  Pure-f32 PyTorch agrees to ~1e-2."""
    (w1, b1, wm, bm, wv, bv, wd1, bd1, wd2, bd2) = params
    x2d = x.reshape(-1, INPUT_SIZE)

    def mm(a, w, bias):
        return jnp.dot(a.astype(jnp.bfloat16), w.astype(jnp.bfloat16),
                       preferred_element_type=jnp.float32) + bias

    h = jnp.maximum(mm(x2d, w1, b1), 0.0)
    mean = mm(h, wm, bm)
    log_var = mm(h, wv, bv)
    eps_bf = eps.astype(jnp.bfloat16).astype(jnp.float32)
    z = eps_bf * jnp.exp(0.5 * log_var) + mean
    d = jnp.maximum(mm(z, wd1, bd1), 0.0)
    recon = jax.nn.sigmoid(mm(d, wd2, bd2))
    return recon, mean, log_var


if __name__ == "__main__":
    key = jax.random.PRNGKey(0)
    k_params, k_x, k_eps = jax.random.split(key, 3)

    params = init_params(k_params)
    prepared = prepare_params(params)   # one-time bf16 cast + head fuse/pad

    # NCHW input, flattened inside forward (x.view(-1, input_size)).
    x = jax.random.uniform(k_x, (BATCH, 1, 16, 16), jnp.float32)     # 1*16*16 = 256
    eps = jax.random.normal(k_eps, (BATCH, LATENT_SIZE), jnp.float32)

    recon, mean, log_var = vae_forward(x, eps, prepared)
    jax.block_until_ready((recon, mean, log_var))

    # Sanity check against the pure-JAX reference (bf16-matmul / bf16-eps matched;
    # recon additionally rounded to bf16 by the kernel store).
    r_ref, m_ref, lv_ref = vae_reference(x, eps, params)
    assert jnp.allclose(recon, r_ref, atol=1e-2, rtol=1e-2)
    assert jnp.allclose(mean, m_ref, atol=1e-2, rtol=1e-2)
    assert jnp.allclose(log_var, lv_ref, atol=1e-2, rtol=1e-2)

    print("KERNEL_OK")
</pallas_src>

<mosaic_0001>
module attributes {stable_mosaic.version = 11 : i64} {
  func.func @vae_kernel(%arg0: i32, %arg1: memref<8x256xbf16, #tpu.memory_space<vmem>>, %arg2: memref<8x32xbf16, #tpu.memory_space<vmem>>, %arg3: memref<256x128xbf16, #tpu.memory_space<vmem>>, %arg4: memref<1x128xf32, #tpu.memory_space<vmem>>, %arg5: memref<128x128xbf16, #tpu.memory_space<vmem>>, %arg6: memref<1x128xf32, #tpu.memory_space<vmem>>, %arg7: memref<32x128xbf16, #tpu.memory_space<vmem>>, %arg8: memref<1x128xf32, #tpu.memory_space<vmem>>, %arg9: memref<128x256xbf16, #tpu.memory_space<vmem>>, %arg10: memref<1x256xf32, #tpu.memory_space<vmem>>, %arg11: memref<8x256xbf16, #tpu.memory_space<vmem>>, %arg12: memref<8x128xf32, #tpu.memory_space<vmem>>) attributes {dimension_semantics = [#tpu.dimension_semantics<parallel>], iteration_bounds = array<i64: 1>, scalar_prefetch = 0 : i64, scratch_operands = 0 : i64, tpu.core_type = #tpu.core_type<tc>, window_params = [{transform_indices = @transform_0, window_bounds = array<i64: 8, 256>}, {transform_indices = @transform_1, window_bounds = array<i64: 8, 32>}, {pipeline_mode = #tpu.pipeline_mode<synchronous>, transform_indices = @transform_2, window_bounds = array<i64: 256, 128>}, {pipeline_mode = #tpu.pipeline_mode<synchronous>, transform_indices = @transform_3, window_bounds = array<i64: 1, 128>}, {pipeline_mode = #tpu.pipeline_mode<synchronous>, transform_indices = @transform_4, window_bounds = array<i64: 128, 128>}, {pipeline_mode = #tpu.pipeline_mode<synchronous>, transform_indices = @transform_5, window_bounds = array<i64: 1, 128>}, {pipeline_mode = #tpu.pipeline_mode<synchronous>, transform_indices = @transform_6, window_bounds = array<i64: 32, 128>}, {pipeline_mode = #tpu.pipeline_mode<synchronous>, transform_indices = @transform_7, window_bounds = array<i64: 1, 128>}, {pipeline_mode = #tpu.pipeline_mode<synchronous>, transform_indices = @transform_8, window_bounds = array<i64: 128, 256>}, {pipeline_mode = #tpu.pipeline_mode<synchronous>, transform_indices = @transform_9, window_bounds = array<i64: 1, 256>}, {transform_indices = @transform_10, window_bounds = array<i64: 8, 256>}, {transform_indices = @transform_11, window_bounds = array<i64: 8, 128>}]} {
    %c0 = arith.constant 0 : index
    %c0_0 = arith.constant 0 : index
    %0 = vector.load %arg1[%c0, %c0_0] : memref<8x256xbf16, #tpu.memory_space<vmem>>, vector<8x256xbf16>
    %c0_1 = arith.constant 0 : index
    %c0_2 = arith.constant 0 : index
    %1 = vector.load %arg3[%c0_1, %c0_2] : memref<256x128xbf16, #tpu.memory_space<vmem>>, vector<256x128xbf16>
    %cst = arith.constant dense<0.000000e+00> : vector<8x128xf32>
    %2 = tpu.matmul %0, %1, %cst {dimension_numbers = #tpu.dot_dimension_numbers<[1], [0], [0], [1], [0, 0, 1, 1], [], []>} : vector<8x256xbf16>, vector<256x128xbf16>, vector<8x128xf32> -> vector<8x128xf32>
    %c0_3 = arith.constant 0 : index
    %c0_4 = arith.constant 0 : index
    %3 = vector.load %arg4[%c0_3, %c0_4] : memref<1x128xf32, #tpu.memory_space<vmem>>, vector<1x128xf32>
    %4 = vector.broadcast %3 : vector<1x128xf32> to vector<8x128xf32>
    %5 = arith.addf %2, %4 : vector<8x128xf32>
    %cst_5 = arith.constant 0.000000e+00 : f32
    %6 = vector.broadcast %cst_5 : f32 to vector<8x128xf32>
    %7 = arith.maximumf %5, %6 : vector<8x128xf32>
    %8 = arith.truncf %7 : vector<8x128xf32> to vector<8x128xbf16>
    %c0_6 = arith.constant 0 : index
    %c0_7 = arith.constant 0 : index
    %9 = vector.load %arg5[%c0_6, %c0_7] : memref<128x128xbf16, #tpu.memory_space<vmem>>, vector<128x128xbf16>
    %cst_8 = arith.constant dense<0.000000e+00> : vector<8x128xf32>
    %10 = tpu.matmul %8, %9, %cst_8 {dimension_numbers = #tpu.dot_dimension_numbers<[1], [0], [0], [1], [0, 0, 1, 1], [], []>} : vector<8x128xbf16>, vector<128x128xbf16>, vector<8x128xf32> -> vector<8x128xf32>
    %c0_9 = arith.constant 0 : index
    %c0_10 = arith.constant 0 : index
    %11 = vector.load %arg6[%c0_9, %c0_10] : memref<1x128xf32, #tpu.memory_space<vmem>>, vector<1x128xf32>
    %12 = vector.broadcast %11 : vector<1x128xf32> to vector<8x128xf32>
    %13 = arith.addf %10, %12 : vector<8x128xf32>
    %14 = vector.extract_strided_slice %13 {offsets = [0, 0], sizes = [8, 32], strides = [1, 1]} : vector<8x128xf32> to vector<8x32xf32>
    %15 = vector.extract_strided_slice %13 {offsets = [0, 32], sizes = [8, 32], strides = [1, 1]} : vector<8x128xf32> to vector<8x32xf32>
    %cst_11 = arith.constant 5.000000e-01 : f32
    %16 = vector.broadcast %cst_11 : f32 to vector<8x32xf32>
    %17 = arith.mulf %16, %15 : vector<8x32xf32>
    %18 = math.exp %17 : vector<8x32xf32>
    %c0_12 = arith.constant 0 : index
    %c0_13 = arith.constant 0 : index
    %19 = vector.load %arg2[%c0_12, %c0_13] : memref<8x32xbf16, #tpu.memory_space<vmem>>, vector<8x32xbf16>
    %20 = arith.extf %19 : vector<8x32xbf16> to vector<8x32xf32>
    %21 = arith.mulf %20, %18 : vector<8x32xf32>
    %22 = arith.addf %21, %14 : vector<8x32xf32>
    %23 = arith.truncf %22 : vector<8x32xf32> to vector<8x32xbf16>
    %c0_14 = arith.constant 0 : index
    %c0_15 = arith.constant 0 : index
    %24 = vector.load %arg7[%c0_14, %c0_15] : memref<32x128xbf16, #tpu.memory_space<vmem>>, vector<32x128xbf16>
    %cst_16 = arith.constant dense<0.000000e+00> : vector<8x128xf32>
    %25 = tpu.matmul %23, %24, %cst_16 {dimension_numbers = #tpu.dot_dimension_numbers<[1], [0], [0], [1], [0, 0, 1, 1], [], []>} : vector<8x32xbf16>, vector<32x128xbf16>, vector<8x128xf32> -> vector<8x128xf32>
    %c0_17 = arith.constant 0 : index
    %c0_18 = arith.constant 0 : index
    %26 = vector.load %arg8[%c0_17, %c0_18] : memref<1x128xf32, #tpu.memory_space<vmem>>, vector<1x128xf32>
    %27 = vector.broadcast %26 : vector<1x128xf32> to vector<8x128xf32>
    %28 = arith.addf %25, %27 : vector<8x128xf32>
    %cst_19 = arith.constant 0.000000e+00 : f32
    %29 = vector.broadcast %cst_19 : f32 to vector<8x128xf32>
    %30 = arith.maximumf %28, %29 : vector<8x128xf32>
    %31 = arith.truncf %30 : vector<8x128xf32> to vector<8x128xbf16>
    %c0_20 = arith.constant 0 : index
    %c0_21 = arith.constant 0 : index
    %32 = vector.load %arg9[%c0_20, %c0_21] : memref<128x256xbf16, #tpu.memory_space<vmem>>, vector<128x256xbf16>
    %cst_22 = arith.constant dense<0.000000e+00> : vector<8x256xf32>
    %33 = tpu.matmul %31, %32, %cst_22 {dimension_numbers = #tpu.dot_dimension_numbers<[1], [0], [0], [1], [0, 0, 1, 1], [], []>} : vector<8x128xbf16>, vector<128x256xbf16>, vector<8x256xf32> -> vector<8x256xf32>
    %c0_23 = arith.constant 0 : index
    %c0_24 = arith.constant 0 : index
    %34 = vector.load %arg10[%c0_23, %c0_24] : memref<1x256xf32, #tpu.memory_space<vmem>>, vector<1x256xf32>
    %35 = vector.broadcast %34 : vector<1x256xf32> to vector<8x256xf32>
    %36 = arith.addf %33, %35 : vector<8x256xf32>
    %37 = arith.negf %36 : vector<8x256xf32>
    %38 = math.exp %37 : vector<8x256xf32>
    %cst_25 = arith.constant 1.000000e+00 : f32
    %39 = vector.broadcast %cst_25 : f32 to vector<8x256xf32>
    %40 = arith.addf %39, %38 : vector<8x256xf32>
    %41 = arith.divf %39, %40 : vector<8x256xf32>
    %42 = arith.truncf %41 : vector<8x256xf32> to vector<8x256xbf16>
    %c0_26 = arith.constant 0 : index
    %c0_27 = arith.constant 0 : index
    %43 = vector.load %arg11[%c0_26, %c0_27] : memref<8x256xbf16, #tpu.memory_space<vmem>>, vector<8x256xbf16>
    tpu.vector_store %arg11[%c0_26, %c0_27], %42 {strides = array<i32>} : memref<8x256xbf16, #tpu.memory_space<vmem>>, vector<8x256xbf16>,
    %c0_28 = arith.constant 0 : index
    %c0_29 = arith.constant 0 : index
    %44 = vector.load %arg12[%c0_28, %c0_29] : memref<8x128xf32, #tpu.memory_space<vmem>>, vector<8x128xf32>
    tpu.vector_store %arg12[%c0_28, %c0_29], %13 {strides = array<i32>} : memref<8x128xf32, #tpu.memory_space<vmem>>, vector<8x128xf32>,
    return
  }
  func.func @transform_0(%arg0: i32) -> (i32, i32) {
    %c0_i32 = arith.constant 0 : i32
    %c0_i32_0 = arith.constant 0 : i32
    return %arg0, %c0_i32 : i32, i32
  }
  func.func @transform_1(%arg0: i32) -> (i32, i32) {
    %c0_i32 = arith.constant 0 : i32
    %c0_i32_0 = arith.constant 0 : i32
    return %arg0, %c0_i32 : i32, i32
  }
  func.func @transform_2(%arg0: i32) -> (i32, i32) {
    %c0_i32 = arith.constant 0 : i32
    %c0_i32_0 = arith.constant 0 : i32
    %c0_i32_1 = arith.constant 0 : i32
    return %c0_i32, %c0_i32_0 : i32, i32
  }
  func.func @transform_3(%arg0: i32) -> (i32, i32) {
    %c0_i32 = arith.constant 0 : i32
    %c0_i32_0 = arith.constant 0 : i32
    %c0_i32_1 = arith.constant 0 : i32
    return %c0_i32, %c0_i32_0 : i32, i32
  }
  func.func @transform_4(%arg0: i32) -> (i32, i32) {
    %c0_i32 = arith.constant 0 : i32
    %c0_i32_0 = arith.constant 0 : i32
    %c0_i32_1 = arith.constant 0 : i32
    return %c0_i32, %c0_i32_0 : i32, i32
  }
  func.func @transform_5(%arg0: i32) -> (i32, i32) {
    %c0_i32 = arith.constant 0 : i32
    %c0_i32_0 = arith.constant 0 : i32
    %c0_i32_1 = arith.constant 0 : i32
    return %c0_i32, %c0_i32_0 : i32, i32
  }
  func.func @transform_6(%arg0: i32) -> (i32, i32) {
    %c0_i32 = arith.constant 0 : i32
    %c0_i32_0 = arith.constant 0 : i32
    %c0_i32_1 = arith.constant 0 : i32
    return %c0_i32, %c0_i32_0 : i32, i32
  }
  func.func @transform_7(%arg0: i32) -> (i32, i32) {
    %c0_i32 = arith.constant 0 : i32
    %c0_i32_0 = arith.constant 0 : i32
    %c0_i32_1 = arith.constant 0 : i32
    return %c0_i32, %c0_i32_0 : i32, i32
  }
  func.func @transform_8(%arg0: i32) -> (i32, i32) {
    %c0_i32 = arith.constant 0 : i32
    %c0_i32_0 = arith.constant 0 : i32
    %c0_i32_1 = arith.constant 0 : i32
    return %c0_i32, %c0_i32_0 : i32, i32
  }
  func.func @transform_9(%arg0: i32) -> (i32, i32) {
    %c0_i32 = arith.constant 0 : i32
    %c0_i32_0 = arith.constant 0 : i32
    %c0_i32_1 = arith.constant 0 : i32
    return %c0_i32, %c0_i32_0 : i32, i32
  }
  func.func @transform_10(%arg0: i32) -> (i32, i32) {
    %c0_i32 = arith.constant 0 : i32
    %c0_i32_0 = arith.constant 0 : i32
    return %arg0, %c0_i32 : i32, i32
  }
  func.func @transform_11(%arg0: i32) -> (i32, i32) {
    %c0_i32 = arith.constant 0 : i32
    %c0_i32_0 = arith.constant 0 : i32
    return %arg0, %c0_i32 : i32, i32
  }
}

</mosaic_0001>

<bundles_post_ra>
// kernel: vae_forward.1
= control target key start
LH: loop header
LB: loop body
LE: loop exit
PB: predicated region body
PF: predicated region fallthrough
CT: control target
= control target key end

     0   :  { %17 = vsyncpa [#allocation3], 0  ;;  %s1159_s0 = inlined_call_operand.vmem [shape: bf16[8,256], index: 0, kind: input, shape index: {}]   ;;  %s1160_s1 = inlined_call_operand.vmem [shape: bf16[8,32], index: 1, kind: input, shape index: {}]   ;;  %s1161_s2 = inlined_call_operand.vmem [shape: bf16[256,128], index: 2, kind: input, shape index: {}]   ;;  %s1162_s3 = inlined_call_operand.vmem [shape: f32[1,128], index: 3, kind: input, shape index: {}]   ;;  %s1163_s4 = inlined_call_operand.hbm [shape: bf16[128,128], index: 4, kind: input, shape index: {}]   ;;  %s1164_s5 = inlined_call_operand.hbm [shape: f32[1,128], index: 5, kind: input, shape index: {}]   ;;  %s1165_s6 = inlined_call_operand.vmem [shape: bf16[32,128], index: 6, kind: input, shape index: {}]   ;;  %s1166_s7 = inlined_call_operand.hbm [shape: f32[1,128], index: 7, kind: input, shape index: {}]   ;;  %s1167_s8 = inlined_call_operand.vmem [shape: bf16[128,256], index: 8, kind: input, shape index: {}]   ;;  %s1168_s9 = inlined_call_operand.hbm [shape: f32[1,256], index: 9, kind: input, shape index: {}]   ;;  %s1169_s10 = inlined_call_operand.vmem [shape: bf16[8,256], index: 10, kind: output, shape index: {0}]   ;;  %s1170_s11 = inlined_call_operand.vmem [shape: f32[8,128], index: 11, kind: output, shape index: {1}]  }
   0x1   :  { %18 = vsyncpa [#allocation5], 0  ;;  %s46_s19 = sshll.u32 %s1164_s5, 4  ;;  %s47_s19 = int_to_ptr.hbm [resolvable:$true] %s46_s19 }
   0x2   :  { %19 = vsyncpa [#allocation8], 0  ;;  %s910_s20 = smov [#allocation4]   ;;  %s32_s24 = sshll.u32 %s1163_s4, 4  ;;  %s33_s24 = int_to_ptr.hbm [resolvable:$true] %s32_s24 }
   0x3   :  { %s48_s21 = sshll.u32 %s910_s20, 4  ;;  %s911_s25 = smov [#allocation2]   ;;  %s49_s21 = int_to_ptr.vmem [resolvable:$true] %s48_s21 }
   0x4   :  { %51 = dma.hbm_to_vmem [thread:$0]  %s47_s19, 16, %s49_s21, [#allocation5]  }
   0x5   :  { %s34_s26 = sshll.u32 %s911_s25, 4  ;;  %s912_s27 = smov 64   ;;  %s35_s26 = int_to_ptr.vmem [resolvable:$true] %s34_s26 }
   0x6   :  { %s913_s28 = smov 4   ;;  %s59_s5 = sshll.u32 %s1166_s7, 4  ;;  %s60_s5 = int_to_ptr.hbm [resolvable:$true] %s59_s5 }
   0x7   :  { %40 = dma.hbm_to_vmem [thread:$0]  %s33_s24, 1024, %s35_s26, [#allocation3], %s912_s27, %s912_s27, %s913_s28  }
   0x8   :  { %s914_s12 = smov [#allocation6]   ;;  %s72_s4 = sshll.u32 %s1168_s9, 4  ;;  %s73_s4 = int_to_ptr.hbm [resolvable:$true] %s72_s4 }
   0x9   :  { %s61_s13 = sshll.u32 %s914_s12, 4  ;;  %s915_s16 = smov [#allocation7]   ;;  %s62_s13 = int_to_ptr.vmem [resolvable:$true] %s61_s13 }
   0xa   :  { %64 = dma.hbm_to_vmem [thread:$0]  %s60_s5, 16, %s62_s13, [#allocation5]  }
   0xb   :  { %s74_s17 = sshll.u32 %s915_s16, 4  ;;  %s75_s17 = int_to_ptr.vmem [resolvable:$true] %s74_s17 }
   0xc   :  { %77 = dma.hbm_to_vmem [thread:$0]  %s73_s4, 32, %s75_s17, [#allocation8]  }
   0xd   :  { %904 = dma.done.wait [#allocation3], 1024  }
   0xe   :  { %905 = vsyncadd [#allocation3], 4294966272 }
   0xf   :  { %906 = dma.done.wait [#allocation5], 32  }
  0x10   :  { %907 = vsyncadd [#allocation5], 4294967264 }
  0x11   :  { %908 = dma.done.wait [#allocation8], 32  }
  0x12   :  { %909 = vsyncadd [#allocation8], 4294967264  ;;  %v753_v0 = vld [vmem:[%s1161_s2 + $0x38] sm:$0xff]  ;;  %v752_v2 = vld [vmem:[%s1161_s2 + $0x30] sm:$0xff]  ;;  %vm376_vm0 = vcmask 261120  }
  0x13   :  { %v761_v1 = vld [vmem:[%s1161_s2 + $0x78] sm:$0xff]  ;;  %235 = vmatpush.bf16.msra.mxu0 %v753_v0  ;;  %v760_v3 = vld [vmem:[%s1161_s2 + $0x70] sm:$0xff]  ;;  %v751_v5 = vld [vmem:[%s1161_s2 + $0x28] sm:$0xff] }
  0x14   :  { %248 = vmatpush.bf16.msra.mxu1 %v761_v1  ;;  %v769_v4 = vld [vmem:[#allocation2 + $0x38] sm:$0xff]  ;;  %v759_v6 = vld [vmem:[%s1161_s2 + $0x68] sm:$0xff]  ;;  %v768_v7 = vld [vmem:[#allocation2 + $0x30] sm:$0xff] }
  0x15   :  { %331 = vmatpush.bf16.msra.mxu2 %v769_v4  ;;  %v750_v8 = vld [vmem:[%s1161_s2 + $0x20] sm:$0xff]  ;;  %v767_v10 = vld [vmem:[#allocation2 + $0x28] sm:$0xff]  ;;  %v749_v11 = vld [vmem:[%s1161_s2 + $0x18] sm:$0xff] }
  0x16   :  { %v758_v9 = vld [vmem:[%s1161_s2 + $0x60] sm:$0xff]  ;;  %v757_v12 = vld [vmem:[%s1161_s2 + $0x58] sm:$0xff]  ;;  %v748_v14 = vld [vmem:[%s1161_s2 + $0x10] sm:$0xff] }
  0x17   :  { %236 = vmatpush.bf16.msra.mxu0 %v752_v2  ;;  %v766_v13 = vld [vmem:[#allocation2 + $0x20] sm:$0xff]  ;;  %v756_v15 = vld [vmem:[%s1161_s2 + $0x50] sm:$0xff]  ;;  %v765_v16 = vld [vmem:[#allocation2 + $0x18] sm:$0xff] }
  0x18   :  { %249 = vmatpush.bf16.msra.mxu1 %v760_v3  ;;  %v747_v17 = vld [vmem:[%s1161_s2 + $0x8] sm:$0xff]  ;;  %v95_v19 = vld [vmem:[%s1159_s0] sm:$0xff]  ;;  %v764_v20 = vld [vmem:[#allocation2 + $0x10] sm:$0xff] }
  0x19   :  { %332 = vmatpush.bf16.msra.mxu2 %v768_v7  ;;  %v755_v18 = vld [vmem:[%s1161_s2 + $0x48] sm:$0xff]  ;;  %v133_v21 = vunpack.c.l.b16 %v95_v19  ;;  %v134_v22 = vunpack.c.h.b16 %v95_v19  ;;  %v746_v23 = vld [vmem:[%s1161_s2] sm:$0xff]  ;;  %v738_v47 = vld [vmem:[%s1167_s8 + $0x70] sm:$0xf] }
  0x1a   :  { %v754_v24 = vld [vmem:[%s1161_s2 + $0x40] sm:$0xff]  ;;  %v763_v27 = vld [vmem:[#allocation2 + $0x8] sm:$0xff]  ;;  %v787_v48 = vld [vmem:[%s1167_s8 + $0x74] sm:$0xf0] }
  0x1b   :  { %237 = vmatpush.bf16.msra.mxu0 %v751_v5  ;;  %v135_v25 = vpack.c.b16 %v133_v21, %v133_v21  ;;  %v136_v26 = vpack.c.b16 %v134_v22, %v134_v22  ;;  %v762_v28 = vld [vmem:[#allocation2] sm:$0xff]  ;;  %v771_v45 = vld [vmem:[%s1165_s6 + $0x8] sm:$0xff]  ;;  %v786_v49 = vld [vmem:[%s1167_s8 + $0x74] sm:$0xf]  ;;  %v739_v50 = vor.u32 %v787_v48, %v738_v47 }
  0x1c   :  { %250 = vmatpush.bf16.msra.mxu1 %v759_v6  ;;  %v795_v29 = vld [vmem:[%s1162_s3] ss:$0 sm:$0xff]  ;;  %s916_s3 = smov 96   ;;  %386 = vmatpush.bf16.msra.mxu3 %v771_v45  ;;  %v740_v51 = vld [vmem:[%s1167_s8 + $0x78] sm:$0xf0] }
  0x1d   :  { %333 = vmatpush.bf16.msra.mxu2 %v767_v10  ;;  %v796_v38 = vld [vmem:[#allocation4] ss:$0 sm:$0xff]  ;;  %v785_v53 = vld [vmem:[%s1167_s8 + $0x64] sm:$0xf0]  ;;  %v743_v54 = vor.u32 %v786_v49, %v740_v51  ;;  %v784_v55 = vld [vmem:[%s1167_s8 + $0x64] sm:$0xf] }
  0x1e   :  { %v770_v46 = vld [vmem:[%s1165_s6] sm:$0xff]  ;;  %v732_v56 = vld [vmem:[%s1167_s8 + $0x68] sm:$0xf0]  ;;  %v722_v59 = vld [vmem:[%s1167_s8 + $0x50] sm:$0xf] }
  0x1f   :  { %238 = vmatpush.bf16.msra.mxu0 %v750_v8  ;;  %v730_v52 = vld [vmem:[%s1167_s8 + $0x60] sm:$0xf]  ;;  %v735_v58 = vor.u32 %v784_v55, %v732_v56  ;;  %v783_v60 = vld [vmem:[%s1167_s8 + $0x54] sm:$0xf0]  ;;  %v782_v61 = vld [vmem:[%s1167_s8 + $0x54] sm:$0xf] }
  0x20   :  { %251 = vmatpush.bf16.msra.mxu1 %v758_v9  ;;  %387 = vmatpush.bf16.msra.mxu3 %v770_v46  ;;  %v731_v57 = vor.u32 %v785_v53, %v730_v52  ;;  %v724_v62 = vld [vmem:[%s1167_s8 + $0x58] sm:$0xf0]  ;;  %v723_v63 = vor.u32 %v783_v60, %v722_v59  ;;  %v714_v1 = vld [vmem:[%s1167_s8 + $0x40] sm:$0xf]  ;;  %v781_v2 = vld [vmem:[%s1167_s8 + $0x44] sm:$0xf0] }
  0x21   :  { %334 = vmatpush.bf16.msra.mxu2 %v766_v13  ;;  %v727_v0 = vor.u32 %v782_v61, %v724_v62  ;;  %v780_v3 = vld [vmem:[%s1167_s8 + $0x44] sm:$0xf]  ;;  %v716_v4 = vld [vmem:[%s1167_s8 + $0x48] sm:$0xf0]  ;;  %v715_v5 = vor.u32 %v781_v2, %v714_v1  ;;  %v706_v7 = vld [vmem:[%s1167_s8 + $0x30] sm:$0xf] }
  0x22   :  { %v719_v6 = vor.u32 %v780_v3, %v716_v4  ;;  %v779_v8 = vld [vmem:[%s1167_s8 + $0x34] sm:$0xf0]  ;;  %v778_v9 = vld [vmem:[%s1167_s8 + $0x34] sm:$0xf]  ;;  %v708_v10 = vld [vmem:[%s1167_s8 + $0x38] sm:$0xf0] }
  0x23   :  { %239 = vmatpush.bf16.msra.mxu0 %v749_v11  ;;  %v707_v11 = vor.u32 %v779_v8, %v706_v7  ;;  %v698_v13 = vld [vmem:[%s1167_s8 + $0x20] sm:$0xf] }
  0x24   :  { %252 = vmatpush.bf16.msra.mxu1 %v757_v12  ;;  %497 = vmatpush.bf16.msrb.mxu3 %v739_v50  ;;  %v711_v12 = vor.u32 %v778_v9, %v708_v10 }
  0x25   :  { %335 = vmatpush.bf16.msra.mxu2 %v765_v16  ;;  %v700_v16 = vld [vmem:[%s1167_s8 + $0x28] sm:$0xf0] }
  0x27   :  { %240 = vmatpush.bf16.msra.mxu0 %v748_v14  ;;  %v777_v14 = vld [vmem:[%s1167_s8 + $0x24] sm:$0xf0] }
  0x28   :  { %253 = vmatpush.bf16.msra.mxu1 %v756_v15  ;;  %498 = vmatpush.bf16.msrb.mxu3 %v731_v57  ;;  %v776_v15 = vld [vmem:[%s1167_s8 + $0x24] sm:$0xf] }
  0x29   :  { %336 = vmatpush.bf16.msra.mxu2 %v764_v20  ;;  %v703_v19 = vor.u32 %v776_v15, %v700_v16 }
  0x2b   :  { %241 = vmatpush.bf16.msra.mxu0 %v747_v17  ;;  %v347_v17 = vld [vmem:[%s1160_s1] sm:$0xf] }
  0x2c   :  { %254 = vmatpush.bf16.msra.mxu1 %v755_v18  ;;  %499 = vmatpush.bf16.msrb.mxu3 %v723_v63  ;;  %v699_v18 = vor.u32 %v777_v14, %v698_v13  ;;  %v348_v20 = vunpack.c.l.bf16 %v347_v17 }
  0x2d   :  { %337 = vmatpush.bf16.msra.mxu2 %v763_v27  ;;  %v774_v27 = vld [vmem:[%s1167_s8 + $0x14] sm:$0xf] }
  0x2f   :  { %242 = vmatpush.bf16.msra.mxu0 %v746_v23 }
  0x30   :  { %255 = vmatpush.bf16.msra.mxu1 %v754_v24  ;;  %500 = vmatpush.bf16.msrb.mxu3 %v715_v5 }
  0x31   :  { %338 = vmatpush.bf16.msra.mxu2 %v762_v28 }
  0x32   :  { %243 = vmatmul.bf16.vlgmr.msra.gmra.mxu0 %v135_v25  ;;  %v690_v25 = vld [vmem:[%s1167_s8 + $0x10] sm:$0xf] }
  0x33   :  { %256 = vmatmul.bf16.vlgmr.msra.gmra.mxu1 %v136_v26  ;;  %510 = vmatpush.bf16.msrb.mxu0 %v743_v54  ;;  %v775_v26 = vld [vmem:[%s1167_s8 + $0x14] sm:$0xf0] }
  0x34   :  { %501 = vmatpush.bf16.msrb.mxu3 %v707_v11  ;;  %v691_v28 = vor.u32 %v775_v26, %v690_v25 }
  0x37   :  { %511 = vmatpush.bf16.msrb.mxu0 %v735_v58 }
  0x38   :  { %502 = vmatpush.bf16.msrb.mxu3 %v699_v18 }
  0x3b   :  { %512 = vmatpush.bf16.msrb.mxu0 %v727_v0 }
  0x3c   :  { %503 = vmatpush.bf16.msrb.mxu3 %v691_v28 }
  0x3f   :  { %513 = vmatpush.bf16.msrb.mxu0 %v719_v6 }
  0x43   :  { %514 = vmatpush.bf16.msrb.mxu0 %v711_v12 }
  0x47   :  { %515 = vmatpush.bf16.msrb.mxu0 %v703_v19 }
  0xaf   :  { %v244_v30 = vpop.f32.mrf.mxu0 }
  0xb0   :  { %v257_v31 = vpop.f32.mrf.mxu1  ;;  %v245_v32 = vadd.f32 %v795_v29, %v244_v30  ;;  %v692_v29 = vld [vmem:[%s1167_s8 + $0x18] sm:$0xf0] }
  0xb1   :  { %v695_v30 = vor.u32 %v774_v27, %v692_v29 }
  0xb2   :  { %v258_v33 = vadd.f32 %v257_v31, %v245_v32  ;;  %v682_v31 = vld [vmem:[%s1167_s8] sm:$0xf]  ;;  %v773_v32 = vld [vmem:[%s1167_s8 + $0x4] sm:$0xf0] }
  0xb3   :  { %516 = vmatpush.bf16.msrb.mxu0 %v695_v30 }
  0xb4   :  { %v261_v34 = vmax.f32 %v258_v33, 0.0  ;;  %v772_v33 = vld [vmem:[%s1167_s8 + $0x4] sm:$0xf] }
  0xb6   :  { %v262_v35 = vpack.c.bf16 %v261_v34, %v261_v34  ;;  %v683_v34 = vor.u32 %v773_v32, %v682_v31 }
  0xb7   :  { %v246_v36 = vpop.f32.mrf.mxu0 }
  0xb8   :  { %v259_v37 = vpop.f32.mrf.mxu1  ;;  %339 = vmatmul.bf16.vlgmr.msra.gmra.mxu2 %v262_v35  ;;  %v684_v35 = vld [vmem:[%s1167_s8 + $0x8] sm:$0xf0]  ;;  %504 = vmatpush.bf16.msrb.mxu3 %v683_v34 }
  0xb9   :  { %v687_v36 = vor.u32 %v772_v33, %v684_v35  ;;  %v797_v37 = vld [vmem:[#allocation6] ss:$0 sm:$0xff] }
  0xbb   :  { %517 = vmatpush.bf16.msrb.mxu0 %v687_v36 }
 0x13b   :  { %v340_v39 = vpop.f32.mrf.mxu2 }
 0x13c   :  { %v1043_v40 = vadd.f32 %v796_v38, %v340_v39 }
 0x13e   :  { %v344_v41 = vmul.f32 0.5, %v1043_v40  ;;  %563 = vst [vmem:[%s1170_s11] sm:$0xff] %v1043_v40 }
 0x140   :  { %v345_v42 = vmul.f32 1.442695, %v344_v41 }
 0x142   :  { %798 = vpow2.f32 %v345_v42 }
 0x143   :  { %v342_v43 = vpop.f32.mrf.mxu2 }
 0x144   :  { %v411_v43 = vld [vmem:[#allocation7] sm:$0x3] }
 0x145   :  { %v413_v48 = vperm.slane %v411_v43, 0 }
 0x148   :  { %v799_v44 = vpop.eup %798 }
 0x149   :  { %350 = vrot.lane.b32.xlu0 %v799_v44, %s916_s3  ;;  %v414_v44 = vperm.slane %v411_v43, 1 }
 0x1bb   :  { %v351_v21 = vpop.permute.xlu0 %350 }
 0x1bc   :  { %v353_v22 = vmul.f32 %v351_v21, %v348_v20 }
 0x1be   :  { %v354_v23 = vadd.f32 %v353_v22, %v1043_v40 }
 0x1c0   :  { %v355_v24 = vpack.c.bf16 %v354_v23, %v354_v23 }
 0x1c2   :  { %679 = vmatmul.msk.bf16.vlgmr.msra.gmra.mxu3 %vm376_vm0, %v355_v24 }
 0x245   :  { %v389_v38 = vpop.f32.mrf.mxu3 }
 0x246   :  { %v390_v39 = vadd.f32 %v797_v37, %v389_v38 }
 0x248   :  { %v393_v40 = vmax.f32 %v390_v39, 0.0 }
 0x24a   :  { %v394_v41 = vpack.c.bf16 %v393_v40, %v393_v40 }
 0x24c   :  { %505 = vmatmul.bf16.vlgmr.msrb.gmra.mxu3 %v394_v41  ;;  %518 = vmatmul.bf16.vlgmr.msrb.gmra.mxu0 %v394_v41 }
 0x24d   :  { %v391_v42 = vpop.f32.mrf.mxu3 }
 0x2c9   :  { %v519_v45 = vpop.f32.mrf.mxu0 }
 0x2ca   :  { %v520_v46 = vadd.f32 %v519_v45, %v414_v44 }
 0x2cc   :  { %v745_v47 = vmul.f32 -1.442695, %v520_v46 }
 0x2ce   :  { %800 = vpow2.f32 %v745_v47 }
 0x2cf   :  { %v506_v49 = vpop.f32.mrf.mxu3 }
 0x2d0   :  { %v507_v50 = vadd.f32 %v506_v49, %v413_v48 }
 0x2d1   :  { %v521_v51 = vpop.f32.mrf.mxu0 }
 0x2d2   :  { %v744_v52 = vmul.f32 -1.442695, %v507_v50 }
 0x2d4   :  { %v801_v53 = vpop.eup %800  ;;  %802 = vpow2.f32 %v744_v52 }
 0x2d5   :  { %v530_v54 = vadd.f32 1.0, %v801_v53 }
 0x2d7   :  { %804 = vrcp.f32 %v530_v54  ;;  %v508_v55 = vpop.f32.mrf.mxu3  ;;  %vm551_vm2 = vweird.f32 %v530_v54  ;;  %v557_v2 = vand.u32 2147483648, %v530_v54  ;;  %v555_v4 = vand.u32 2147483647, %v530_v54 }
 0x2d9   :  { %v558_v9 = vor.u32 1.1754944e-38, %v557_v2  ;;  %vm556_vm7 = vcmp.eq.f32.partialorder %v555_v4, 8.507059e+37 }
 0x2da   :  { %v803_v56 = vpop.eup %802 }
 0x2db   :  { %v529_v57 = vadd.f32 1.0, %v803_v56 }
 0x2dd   :  { %v805_v58 = vpop.eup %804  ;;  %806 = vrcp.f32 %v529_v57  ;;  %v542_v3 = vand.u32 2147483648, %v529_v57  ;;  %v540_v6 = vand.u32 2147483647, %v529_v57  ;;  %vm536_vm5 = vweird.f32 %v529_v57 }
 0x2de   :  { %v547_v59 = vmul.f32 %v805_v58, %v530_v54  ;;  %vm552_vm1 = vweird.f32 %v805_v58 }
 0x2df   :  { %vm553_vm4 = vmor %vm551_vm2, %vm552_vm1  ;;  %v543_v10 = vor.u32 1.1754944e-38, %v542_v3  ;;  %vm541_vm8 = vcmp.eq.f32.partialorder %v540_v6, 8.507059e+37 }
 0x2e0   :  { %v548_v60 = vsub.f32 1.0, %v547_v59 }
 0x2e2   :  { %v549_v61 = vmul.f32 %v805_v58, %v548_v60 }
 0x2e3   :  { %v807_v62 = vpop.eup %806 }
 0x2e4   :  { %v532_v63 = vmul.f32 %v807_v62, %v529_v57  ;;  %v550_v0 = vadd.f32 %v805_v58, %v549_v61  ;;  %vm537_vm3 = vweird.f32 %v807_v62 }
 0x2e5   :  { %vm538_vm6 = vmor %vm536_vm5, %vm537_vm3 }
 0x2e6   :  { %v533_v1 = vsub.f32 1.0, %v532_v63  ;;  %v554_v7 = vsel %vm553_vm4, %v805_v58, %v550_v0 }
 0x2e7   :  { %v559_v12 = vsel %vm556_vm7, %v558_v9, %v554_v7 }
 0x2e8   :  { %v534_v5 = vmul.f32 %v807_v62, %v533_v1 }
 0x2ea   :  { %v535_v8 = vadd.f32 %v807_v62, %v534_v5 }
 0x2ec   :  { %v539_v11 = vsel %vm538_vm6, %v807_v62, %v535_v8 }
 0x2ed   :  { %v544_v13 = vsel %vm541_vm8, %v543_v10, %v539_v11 }
 0x2ee   :  { %v561_v14 = vpack.c.bf16 %v559_v12, %v544_v13 }
 0x2f0   :  { %562 = vst [vmem:[%s1169_s10] sm:$0xff] %v561_v14 }
 0x2f1   :  { %572 = vsyncpa [#allocation3], 1 }
 0x2f2   :  { %573 = vsyncpa [#allocation5], 1 }
 0x2f3   :  { %574 = vsyncpa [#allocation8], 1 }

</bundles_post_ra>
